<compile_context>
chip_gen: v7x
topology: tpu7x:2x2x1
jax: 0.10.0
libtpu: 0.0.40
codegen_flags: <defaults>
</compile_context>

<pallas_src>
import numpy as np
import jax
import jax.numpy as jnp
from jax import lax
from jax.experimental import pallas as pl
from jax.experimental.pallas import tpu as pltpu

LANE = 128            # lane-axis padding (negatives axis, feature axis)
SUBLANE = 8           # sublane-axis padding (positives axis, anchor tiles)
BIG = 1e30            # sentinel used to fold validity masks into distances
HINGE_VMEM_BUDGET = 8 * 1024 * 1024   # bytes for the (TILE_A, P, N) intermediate
VMEM_LIMIT = 32 * 1024 * 1024         # safe on v5e/v6e/v7x


def _round_up(x, m):
    return ((x + m - 1) // m) * m


def _choose_tile_a(n, p_pad, n_lane, budget=HINGE_VMEM_BUDGET):
    """Largest anchor tile (multiple of 8, <=128) whose hinge tensor fits budget."""
    cap = _round_up(n, SUBLANE)          # never pad anchors beyond what n needs
    for t in (128, 64, 32, 16, 8):
        t_eff = min(t, cap)
        if t_eff * p_pad * n_lane * 4 <= budget:
            return t_eff
    # TODO(synk): add a second (parallel) grid axis over the n lane axis for
    # very large batches so the hinge intermediate stays bounded on v7x.
    return SUBLANE


# ---------------------------------------------------------------------------
# Host-side reference selector ("all valid triplets") -- only used for the
# correctness check in __main__.
# ---------------------------------------------------------------------------
def all_triplets(labels):
    labels = np.asarray(labels)
    n = len(labels)
    out = []
    for a in range(n):
        for p in range(n):
            if p == a or labels[p] != labels[a]:
                continue
            for g in range(n):
                if labels[g] == labels[a]:
                    continue
                out.append((a, p, g))
    return np.asarray(out, dtype=np.int32).reshape(-1, 3)


# ---------------------------------------------------------------------------
# Kernel A: pairwise squared distances on the MXU, gridded over anchor rows.
#   dm[i, j] = max(||x_i||^2 + ||x_j||^2 - 2 <x_i, x_j>, 0)
# ---------------------------------------------------------------------------
def _pairwise_sqdist_kernel(xa_ref, xb_ref, rn_ref, dm_ref):
    xa = xa_ref[...]                                         # (TILE_A, D_pad)
    rn_a = jnp.sum(xa * xa, axis=1, keepdims=True)           # (TILE_A, 1)
    g = lax.dot_general(xa, xb_ref[...], (((1,), (1,)), ((), ())),
                        preferred_element_type=jnp.float32)  # (TILE_A, N_lane)
    dm_ref[...] = jnp.maximum(rn_a + rn_ref[...] - 2.0 * g, 0.0)


def pairwise_sqdist(xa_pad, xb_pad, rn_row, tile_a):
    n_anchor, d_pad = xa_pad.shape
    n_lane = xb_pad.shape[0]
    # TODO(synk): tile the D (contraction) axis and the xb rows for very large
    # N*D; a whole-X block is fine for typical online-triplet batch sizes.
    return pl.pallas_call(
        _pairwise_sqdist_kernel,
        out_shape=jax.ShapeDtypeStruct((n_anchor, n_lane), jnp.float32),
        grid=(n_anchor // tile_a,),
        in_specs=[
            pl.BlockSpec((tile_a, d_pad), lambda i: (i, 0)),   # anchor rows
            pl.BlockSpec((n_lane, d_pad), lambda i: (0, 0)),   # all samples
            pl.BlockSpec((1, n_lane), lambda i: (0, 0)),       # row norms (lane-dense)
        ],
        out_specs=pl.BlockSpec((tile_a, n_lane), lambda i: (i, 0)),
        compiler_params=pltpu.CompilerParams(
            dimension_semantics=("parallel",),
            vmem_limit_bytes=VMEM_LIMIT),
    )(xa_pad, xb_pad, rn_row)


# ---------------------------------------------------------------------------
# Kernel B: all-valid-triplet hinge with sentinel-folded masks, per anchor tile.
#   dap[a, p] = d(a,p) + margin  if (a,p) valid positive pair else -BIG
#   dan[a, n] = d(a,n)           if (a,n) valid negative pair else +BIG
#   out[a, n] = sum_p relu(dap[a, p] - dan[a, n])
# Cross-block / cross-n reduction happens in the wrapper (two-level f32 sum,
# keeps the grid axis fully parallel and the output lane-dense).
# ---------------------------------------------------------------------------
def _triplet_hinge_kernel(dap_ref, dan_ref, out_ref):
    dap = dap_ref[...]                                       # (TILE_A, P_pad)
    dan = dan_ref[...]                                       # (TILE_A, N_lane)
    # TODO(synk): on v6e/v7x the elementwise hinge could run in bf16 (f32 accum)
    # for ~2x VPU throughput; kept f32 here for v5e and numerical headroom.
    hinge = jnp.maximum(dap[:, :, None] - dan[:, None, :], 0.0)
    out_ref[...] = jnp.sum(hinge, axis=1)                    # (TILE_A, N_lane)


def triplet_hinge_sum(dap_m, dan_m, tile_a):
    n_anchor, p_pad = dap_m.shape
    n_lane = dan_m.shape[1]
    partials = pl.pallas_call(
        _triplet_hinge_kernel,
        out_shape=jax.ShapeDtypeStruct((n_anchor, n_lane), jnp.float32),
        grid=(n_anchor // tile_a,),
        in_specs=[
            pl.BlockSpec((tile_a, p_pad), lambda i: (i, 0)),    # d(a,p)+margin / -BIG
            pl.BlockSpec((tile_a, n_lane), lambda i: (i, 0)),   # d(a,n) / +BIG
        ],
        out_specs=pl.BlockSpec((tile_a, n_lane), lambda i: (i, 0)),
        compiler_params=pltpu.CompilerParams(
            dimension_semantics=("parallel",),
            vmem_limit_bytes=VMEM_LIMIT),
    )(dap_m, dan_m)
    return jnp.sum(partials, dtype=jnp.float32)


# ---------------------------------------------------------------------------
# Module-equivalent forward: returns (losses.mean(), num_triplets)
# Fully traceable / jittable: no host sync anywhere.
# ---------------------------------------------------------------------------
def online_triplet_loss(embeddings, target, margin=1.0):
    x = jnp.asarray(embeddings, jnp.float32)
    n, d = x.shape
    lab = jnp.asarray(target, jnp.int32)

    # Selector bookkeeping ("all valid triplets"), O(N^2), on device.
    same = lab[:, None] == lab[None, :]
    eye = jnp.eye(n, dtype=bool)
    pos = same & ~eye          # valid (anchor, positive) pairs
    neg = ~same                # valid (anchor, negative) pairs
    count = jnp.sum(pos.sum(axis=1) * neg.sum(axis=1))      # int32 scalar

    # Decoupled padding: lane axes to 128, positives axis to 8, anchors to TILE_A.
    d_pad = _round_up(d, LANE)
    n_lane = _round_up(n, LANE)
    p_pad = _round_up(n, SUBLANE)
    tile_a = _choose_tile_a(n, p_pad, n_lane)
    n_anchor = _round_up(n, tile_a)

    xa_pad = jnp.pad(x, ((0, n_anchor - n), (0, d_pad - d)))   # anchor rows
    xb_pad = jnp.pad(x, ((0, n_lane - n), (0, d_pad - d)))     # "other sample" rows
    rn_row = jnp.sum(xb_pad * xb_pad, axis=1)[None, :]         # (1, n_lane)

    dm = pairwise_sqdist(xa_pad, xb_pad, rn_row, tile_a)       # (n_anchor, n_lane)

    # Fold masks (and margin) into the distances via sentinels: invalid triplets
    # become relu(very negative) = 0 inside kernel B.
    pos_pad = jnp.pad(pos, ((0, n_anchor - n), (0, p_pad - n)))
    neg_pad = jnp.pad(neg, ((0, n_anchor - n), (0, n_lane - n)))
    margin_f = jnp.asarray(margin, jnp.float32)
    dap_m = jnp.where(pos_pad, dm[:, :p_pad] + margin_f, jnp.float32(-BIG))
    dan_m = jnp.where(neg_pad, dm, jnp.float32(BIG))

    loss_sum = triplet_hinge_sum(dap_m, dan_m, tile_a)

    # TODO(synk): PyTorch's losses.mean() over zero triplets is NaN; guard to 0.
    count_f = count.astype(jnp.float32)
    loss = jnp.where(count > 0, loss_sum / jnp.maximum(count_f, 1.0),
                     jnp.float32(0.0))
    return loss, count


if __name__ == "__main__":
    key = jax.random.PRNGKey(0)
    batch, dim = 8, 32
    embeddings = jax.random.normal(key, (batch, dim), dtype=jnp.float32)
    target = jnp.array([0, 0, 0, 0, 1, 1, 1, 1], dtype=jnp.int32)
    margin = 1.0

    loss_fn = jax.jit(online_triplet_loss)
    loss, count = loss_fn(embeddings, target, margin)
    loss = jax.block_until_ready(loss)
    num_triplets = int(jax.device_get(count))

    # Reference: explicit triplet enumeration (same semantics as the PyTorch forward).
    emb_np = np.asarray(embeddings, dtype=np.float64)
    tri = all_triplets(np.asarray(target))
    ap = ((emb_np[tri[:, 0]] - emb_np[tri[:, 1]]) ** 2).sum(1)
    an = ((emb_np[tri[:, 0]] - emb_np[tri[:, 2]]) ** 2).sum(1)
    ref = np.maximum(ap - an + margin, 0.0).mean()

    assert num_triplets == tri.shape[0], (num_triplets, tri.shape[0])
    assert abs(float(loss) - float(ref)) < 1e-3 * max(1.0, abs(float(ref))), (
        float(loss), float(ref))

    print("KERNEL_OK")
</pallas_src>

<mosaic_0001>
module attributes {stable_mosaic.version = 11 : i64} {
  func.func @_pairwise_sqdist_kernel(%arg0: i32, %arg1: memref<8x128xf32, #tpu.memory_space<vmem>>, %arg2: memref<128x128xf32, #tpu.memory_space<vmem>>, %arg3: memref<1x128xf32, #tpu.memory_space<vmem>>, %arg4: memref<8x128xf32, #tpu.memory_space<vmem>>) attributes {dimension_semantics = [#tpu.dimension_semantics<parallel>], iteration_bounds = array<i64: 1>, scalar_prefetch = 0 : i64, scratch_operands = 0 : i64, tpu.core_type = #tpu.core_type<tc>, window_params = [{transform_indices = @transform_0, window_bounds = array<i64: 8, 128>}, {pipeline_mode = #tpu.pipeline_mode<synchronous>, transform_indices = @transform_1, window_bounds = array<i64: 128, 128>}, {pipeline_mode = #tpu.pipeline_mode<synchronous>, transform_indices = @transform_2, window_bounds = array<i64: 1, 128>}, {transform_indices = @transform_3, window_bounds = array<i64: 8, 128>}]} {
    %c0 = arith.constant 0 : index
    %c0_0 = arith.constant 0 : index
    %0 = vector.load %arg1[%c0, %c0_0] : memref<8x128xf32, #tpu.memory_space<vmem>>, vector<8x128xf32>
    %1 = arith.mulf %0, %0 : vector<8x128xf32>
    %cst = arith.constant dense<0.000000e+00> : vector<8xf32>
    %2 = vector.multi_reduction <add>, %1, %cst [1] : vector<8x128xf32> to vector<8xf32>
    %3 = vector.shape_cast %2 : vector<8xf32> to vector<8x1xf32>
    %c0_1 = arith.constant 0 : index
    %c0_2 = arith.constant 0 : index
    %4 = vector.load %arg2[%c0_1, %c0_2] : memref<128x128xf32, #tpu.memory_space<vmem>>, vector<128x128xf32>
    %cst_3 = arith.constant dense<0.000000e+00> : vector<8x128xf32>
    %5 = tpu.matmul %0, %4, %cst_3 {dimension_numbers = #tpu.dot_dimension_numbers<[1], [1], [0], [0], [0, 0, 1, 0], [], []>} : vector<8x128xf32>, vector<128x128xf32>, vector<8x128xf32> -> vector<8x128xf32>
    %c0_4 = arith.constant 0 : index
    %c0_5 = arith.constant 0 : index
    %6 = vector.load %arg3[%c0_4, %c0_5] : memref<1x128xf32, #tpu.memory_space<vmem>>, vector<1x128xf32>
    %7 = vector.broadcast %3 : vector<8x1xf32> to vector<8x128xf32>
    %8 = vector.broadcast %6 : vector<1x128xf32> to vector<8x128xf32>
    %9 = arith.addf %7, %8 : vector<8x128xf32>
    %cst_6 = arith.constant 2.000000e+00 : f32
    %10 = vector.broadcast %cst_6 : f32 to vector<8x128xf32>
    %11 = arith.mulf %10, %5 : vector<8x128xf32>
    %12 = arith.subf %9, %11 : vector<8x128xf32>
    %cst_7 = arith.constant 0.000000e+00 : f32
    %13 = vector.broadcast %cst_7 : f32 to vector<8x128xf32>
    %14 = arith.maximumf %12, %13 : vector<8x128xf32>
    %c0_8 = arith.constant 0 : index
    %c0_9 = arith.constant 0 : index
    %15 = vector.load %arg4[%c0_8, %c0_9] : memref<8x128xf32, #tpu.memory_space<vmem>>, vector<8x128xf32>
    tpu.vector_store %arg4[%c0_8, %c0_9], %14 {strides = array<i32>} : memref<8x128xf32, #tpu.memory_space<vmem>>, vector<8x128xf32>,
    return
  }
  func.func @transform_0(%arg0: i32) -> (i32, i32) {
    %c0_i32 = arith.constant 0 : i32
    %c0_i32_0 = arith.constant 0 : i32
    return %arg0, %c0_i32 : i32, i32
  }
  func.func @transform_1(%arg0: i32) -> (i32, i32) {
    %c0_i32 = arith.constant 0 : i32
    %c0_i32_0 = arith.constant 0 : i32
    %c0_i32_1 = arith.constant 0 : i32
    return %c0_i32, %c0_i32_0 : i32, i32
  }
  func.func @transform_2(%arg0: i32) -> (i32, i32) {
    %c0_i32 = arith.constant 0 : i32
    %c0_i32_0 = arith.constant 0 : i32
    %c0_i32_1 = arith.constant 0 : i32
    return %c0_i32, %c0_i32_0 : i32, i32
  }
  func.func @transform_3(%arg0: i32) -> (i32, i32) {
    %c0_i32 = arith.constant 0 : i32
    %c0_i32_0 = arith.constant 0 : i32
    return %arg0, %c0_i32 : i32, i32
  }
}

module attributes {stable_mosaic.version = 11 : i64} {
  func.func @_triplet_hinge_kernel(%arg0: i32, %arg1: memref<8x8xf32, #tpu.memory_space<vmem>>, %arg2: memref<8x128xf32, #tpu.memory_space<vmem>>, %arg3: memref<8x128xf32, #tpu.memory_space<vmem>>) attributes {dimension_semantics = [#tpu.dimension_semantics<parallel>], iteration_bounds = array<i64: 1>, scalar_prefetch = 0 : i64, scratch_operands = 0 : i64, tpu.core_type = #tpu.core_type<tc>, window_params = [{transform_indices = @transform_0, window_bounds = array<i64: 8, 8>}, {transform_indices = @transform_1, window_bounds = array<i64: 8, 128>}, {transform_indices = @transform_2, window_bounds = array<i64: 8, 128>}]} {
    %c0 = arith.constant 0 : index
    %c0_0 = arith.constant 0 : index
    %0 = vector.load %arg1[%c0, %c0_0] : memref<8x8xf32, #tpu.memory_space<vmem>>, vector<8x8xf32>
    %c0_1 = arith.constant 0 : index
    %c0_2 = arith.constant 0 : index
    %1 = vector.load %arg2[%c0_1, %c0_2] : memref<8x128xf32, #tpu.memory_space<vmem>>, vector<8x128xf32>
    %2 = vector.shape_cast %0 : vector<8x8xf32> to vector<8x8x1xf32>
    %3 = vector.shape_cast %1 : vector<8x128xf32> to vector<8x1x128xf32>
    %4 = vector.broadcast %2 : vector<8x8x1xf32> to vector<8x8x128xf32>
    %5 = vector.broadcast %3 : vector<8x1x128xf32> to vector<8x8x128xf32>
    %6 = arith.subf %4, %5 : vector<8x8x128xf32>
    %cst = arith.constant 0.000000e+00 : f32
    %7 = vector.broadcast %cst : f32 to vector<8x8x128xf32>
    %8 = arith.maximumf %6, %7 : vector<8x8x128xf32>
    %cst_3 = arith.constant dense<0.000000e+00> : vector<8x128xf32>
    %9 = vector.multi_reduction <add>, %8, %cst_3 [1] : vector<8x8x128xf32> to vector<8x128xf32>
    %c0_4 = arith.constant 0 : index
    %c0_5 = arith.constant 0 : index
    %10 = vector.load %arg3[%c0_4, %c0_5] : memref<8x128xf32, #tpu.memory_space<vmem>>, vector<8x128xf32>
    tpu.vector_store %arg3[%c0_4, %c0_5], %9 {strides = array<i32>} : memref<8x128xf32, #tpu.memory_space<vmem>>, vector<8x128xf32>,
    return
  }
  func.func @transform_0(%arg0: i32) -> (i32, i32) {
    %c0_i32 = arith.constant 0 : i32
    %c0_i32_0 = arith.constant 0 : i32
    return %arg0, %c0_i32 : i32, i32
  }
  func.func @transform_1(%arg0: i32) -> (i32, i32) {
    %c0_i32 = arith.constant 0 : i32
    %c0_i32_0 = arith.constant 0 : i32
    return %arg0, %c0_i32 : i32, i32
  }
  func.func @transform_2(%arg0: i32) -> (i32, i32) {
    %c0_i32 = arith.constant 0 : i32
    %c0_i32_0 = arith.constant 0 : i32
    return %arg0, %c0_i32 : i32, i32
  }
}

</mosaic_0001>

<bundles_post_ra>
// kernel: online_triplet_loss.2
= control target key start
LH: loop header
LB: loop body
LE: loop exit
PB: predicated region body
PF: predicated region fallthrough
CT: control target
= control target key end

     0   :  { %v200_v0 = vmov 0.0|0.0   ;;  %vm201_vm0 = vmmov 0   ;;  %v202_v3 = vmov 0.0   ;;  %s280_s1 = inlined_call_operand.vmem [shape: f32[128,128], index: 1, kind: input, shape index: {}]   ;;  %s281_s0 = inlined_call_operand.vmem [shape: f32[8,128], index: 0, kind: input, shape index: {}]   ;;  %s282_s2 = inlined_call_operand.vmem [shape: f32[1,128], index: 2, kind: input, shape index: {}]   ;;  %s283_s3 = inlined_call_operand.vmem [shape: f32[8,128], index: 3, kind: output, shape index: {}]  }
   0x1   :  { %173 = vmatprep.subr.bf16.mxu0 %v200_v0  ;;  %v18_v1 = vld [vmem:[%s280_s1] sm:$0xff]  ;;  %v19_v2 = vld [vmem:[%s280_s1 + $0x8] sm:$0xff]  ;;  %170 = vmatprep.mubr.msk.f32.mxu0 %vm201_vm0, %v202_v3  ;;  %v20_v5 = vld [vmem:[%s280_s1 + $0x10] sm:$0xff] }
   0x2   :  { %v174_v4 = vpack.c.bf16 %v19_v2, %v18_v1  ;;  %v21_v6 = vld [vmem:[%s280_s1 + $0x18] sm:$0xff]  ;;  %v14_v7 = vld [vmem:[%s281_s0] sm:$0xff]  ;;  %v23_v11 = vld [vmem:[%s280_s1 + $0x28] sm:$0xff] }
   0x3   :  { %v15_v8 = vmul.f32 %v14_v7, %v14_v7  ;;  %v177_v9 = vpack.c.bf16 %v21_v6, %v20_v5  ;;  %v22_v10 = vld [vmem:[%s280_s1 + $0x20] sm:$0xff]  ;;  %v24_v13 = vld [vmem:[%s280_s1 + $0x30] sm:$0xff]  ;;  %v25_v14 = vld [vmem:[%s280_s1 + $0x38] sm:$0xff] }
   0x4   :  { %175 = vmatpush3.bf16.xpose.msra.mxu0 %v174_v4  ;;  %v180_v12 = vpack.c.bf16 %v23_v11, %v22_v10  ;;  %v183_v15 = vpack.c.bf16 %v25_v14, %v24_v13  ;;  %v26_v16 = vld [vmem:[%s280_s1 + $0x40] sm:$0xff]  ;;  %v27_v17 = vld [vmem:[%s280_s1 + $0x48] sm:$0xff]  ;;  %v28_v19 = vld [vmem:[%s280_s1 + $0x50] sm:$0xff] }
   0x5   :  { %176 = vmatprep.subr.bf16.mxu0 %v200_v0  ;;  %16 = vadd.xlane.f32.xlu0 %v15_v8  ;;  %v186_v18 = vpack.c.bf16 %v27_v17, %v26_v16  ;;  %v29_v20 = vld [vmem:[%s280_s1 + $0x58] sm:$0xff]  ;;  %v30_v22 = vld [vmem:[%s280_s1 + $0x60] sm:$0xff]  ;;  %v31_v23 = vld [vmem:[%s280_s1 + $0x68] sm:$0xff] }
   0x6   :  { %v189_v21 = vpack.c.bf16 %v29_v20, %v28_v19  ;;  %v192_v24 = vpack.c.bf16 %v31_v23, %v30_v22  ;;  %v32_v25 = vld [vmem:[%s280_s1 + $0x70] sm:$0xff]  ;;  %v33_v26 = vld [vmem:[%s280_s1 + $0x78] sm:$0xff]  ;;  %v120_v29 = vld [vmem:[%s282_s2] ss:$0 sm:$0xff] }
   0x7   :  { %v195_v27 = vpack.c.bf16 %v33_v26, %v32_v25 }
   0xc   :  { %178 = vmatpush3.bf16.xpose.msra.mxu0 %v177_v9 }
   0xd   :  { %179 = vmatprep.subr.bf16.mxu0 %v200_v0 }
  0x14   :  { %181 = vmatpush3.bf16.xpose.msra.mxu0 %v180_v12 }
  0x15   :  { %182 = vmatprep.subr.bf16.mxu0 %v200_v0 }
  0x1c   :  { %184 = vmatpush3.bf16.xpose.msra.mxu0 %v183_v15 }
  0x1d   :  { %185 = vmatprep.subr.bf16.mxu0 %v200_v0 }
  0x24   :  { %187 = vmatpush3.bf16.xpose.msra.mxu0 %v186_v18 }
  0x25   :  { %188 = vmatprep.subr.bf16.mxu0 %v200_v0 }
  0x2c   :  { %190 = vmatpush3.bf16.xpose.msra.mxu0 %v189_v21 }
  0x2d   :  { %191 = vmatprep.subr.bf16.mxu0 %v200_v0 }
  0x34   :  { %193 = vmatpush3.bf16.xpose.msra.mxu0 %v192_v24 }
  0x35   :  { %194 = vmatprep.subr.bf16.mxu0 %v200_v0 }
  0x3c   :  { %196 = vmatpush3.bf16.xpose.msra.mxu0 %v195_v27 }
  0x43   :  { %171 = vmatmul.mubr.f32.vlgmr.msra.gmra.mrb[0].mxu0 %v14_v7 }
  0x92   :  { %v17_v28 = vpop.xlane.xlu0 %16 }
  0x93   :  { %v111_v30 = vadd.f32 %v120_v29, %v17_v28 }
 0x116   :  { %v100_v31 = vpop.f32.mrb[0].mxu0 }
 0x117   :  { %v112_v32 = vmul.f32 2.0, %v100_v31  ;;  %v172_v33 = vpop.f32.mrb[1].mxu0 }
 0x119   :  { %v113_v34 = vsub.f32 %v111_v30, %v112_v32 }
 0x11b   :  { %v114_v35 = vmax.f32 %v113_v34, 0.0 }
 0x11d   :  { %115 = vst [vmem:[%s283_s3] sm:$0xff] %v114_v35 }

// kernel: online_triplet_loss.3
= control target key start
LH: loop header
LB: loop body
LE: loop exit
PB: predicated region body
PF: predicated region fallthrough
CT: control target
= control target key end

     0   :  { %v13_v0 = vlaneseq  ;;  %v253_v1 = vmov 1966171168   ;;  %vm231_vm0 = vcmask 1041409   ;;  %vm233_vm1 = vcmask 1042434   ;;  %s291_s0 = inlined_call_operand.vmem [shape: f32[8,8], index: 0, kind: input, shape index: {}]   ;;  %s292_s1 = inlined_call_operand.vmem [shape: f32[8,128], index: 1, kind: input, shape index: {}]   ;;  %s293_s2 = inlined_call_operand.vmem [shape: f32[8,128], index: 2, kind: output, shape index: {}]  }
   0x1   :  { %v72_v2 = vunpack.c.l.s4 %v253_v1  ;;  %v11_v4 = vld [vmem:[%s291_s0] sm:$0xff]  ;;  %vm235_vm2 = vcmask 1043459   ;;  %vm237_vm3 = vcmask 1044484   ;;  %vm239_vm4 = vcmask 1045509  }
   0x2   :  { %v14_v3 = vshrl.u32 %v13_v0, 7  ;;  %v12_v10 = vld [vmem:[%s292_s1] sm:$0xff]  ;;  %vm241_vm5 = vcmask 1046534   ;;  %vm243_vm6 = vcmask 1047559  }
   0x3   :  { %v73_v5 = vunpack.c.0.s8 %v72_v2  ;;  %v70_v13 = vcombine.high %v12_v10, %v12_v10 }
   0x4   :  { %v29_v6 = vsub.s32 2, %v14_v3  ;;  %v272_v7 = vsub.s32 0, %v14_v3  ;;  %v36_v8 = vsub.s32 3, %v14_v3  ;;  %v22_v9 = vsub.s32 1, %v14_v3 }
   0x5   :  { %v50_v14 = vsub.s32 5, %v14_v3  ;;  %v43_v15 = vsub.s32 4, %v14_v3  ;;  %v76_v18 = vsub.s32 %v73_v5, %v14_v3  ;;  %v64_v23 = vsub.s32 7, %v14_v3 }
   0x6   :  { %v30_v11 = vrot.slane %v11_v4, %v29_v6  ;;  %v16_v12 = vrot.slane %v11_v4, %v272_v7  ;;  %v37_v16 = vrot.slane %v11_v4, %v36_v8  ;;  %v23_v17 = vrot.slane %v11_v4, %v22_v9 }
   0x7   :  { %v77_v19 = vrot.slane %v12_v10, %v76_v18  ;;  %v84_v20 = vrot.slane %v70_v13, %v76_v18  ;;  %v51_v21 = vrot.slane %v11_v4, %v50_v14  ;;  %v44_v22 = vrot.slane %v11_v4, %v43_v15 }
   0x8   :  { %32 = vbcast.lane.b32.xlu1 %v30_v11, 256  ;;  %18 = vbcast.lane.b32.xlu0 %v16_v12, 256  ;;  %v57_v24 = vsub.s32 6, %v14_v3  ;;  %v65_v33 = vrot.slane %v11_v4, %v64_v23 }
   0x9   :  { %v93_v25 = vrot.slane %v77_v19, %v76_v18  ;;  %v85_v26 = vcombine.high %v77_v19, %v77_v19  ;;  %v86_v27 = vcombine.high %v84_v20, %v84_v20  ;;  %v100_v28 = vrot.slane %v84_v20, %v76_v18 }
   0xa   :  { %v58_v34 = vrot.slane %v11_v4, %v57_v24 }
   0xb   :  { %v115_v29 = vcombine.high %v93_v25, %v93_v25  ;;  %v122_v30 = vrot.slane %v93_v25, %v272_v7  ;;  %v107_v31 = vrot.slane %v85_v26, %v76_v18  ;;  %v114_v32 = vrot.slane %v86_v27, %v76_v18 }
   0xc   :  { %39 = vbcast.lane.b32.xlu1 %v37_v16, 256  ;;  %25 = vbcast.lane.b32.xlu0 %v23_v17, 256  ;;  %v138_v35 = vrot.slane %v100_v28, %v272_v7  ;;  %v116_v36 = vcombine.high %v100_v28, %v100_v28 }
   0xd   :  { %v130_v37 = vrot.slane %v115_v29, %v272_v7  ;;  %v117_v38 = vcombine.high %v107_v31, %v107_v31  ;;  %v126_v39 = vrot.slane %v107_v31, %v272_v7  ;;  %v142_v40 = vrot.slane %v114_v32, %v272_v7 }
   0xe   :  { %v118_v41 = vcombine.high %v114_v32, %v114_v32  ;;  %v146_v42 = vrot.slane %v116_v36, %v272_v7 }
   0xf   :  { %v134_v43 = vrot.slane %v117_v38, %v272_v7 }
  0x10   :  { %53 = vbcast.lane.b32.xlu1 %v51_v21, 256  ;;  %46 = vbcast.lane.b32.xlu0 %v44_v22, 256  ;;  %v150_v44 = vrot.slane %v118_v41, %v272_v7 }
  0x14   :  { %67 = vbcast.lane.b32.xlu1 %v65_v33, 256  ;;  %60 = vbcast.lane.b32.xlu0 %v58_v34, 256 }
  0x7a   :  { %v33_v45 = vpop.permute.xlu1 %32  ;;  %v19_v46 = vpop.permute.xlu0 %18 }
  0x7b   :  { %v161_v47 = vsub.f32 %v33_v45, %v130_v37  ;;  %v159_v48 = vsub.f32 %v19_v46, %v122_v30 }
  0x7d   :  { %v169_v49 = vmax.f32 %v161_v47, 0.0  ;;  %v167_v50 = vmax.f32 %v159_v48, 0.0 }
  0x7e   :  { %v40_v51 = vpop.permute.xlu1 %39  ;;  %v26_v52 = vpop.permute.xlu0 %25 }
  0x7f   :  { %v187_v53 = vrot.slane %v169_v49, 4  ;;  %v175_v54 = vrot.slane %v167_v50, 4  ;;  %v162_v55 = vsub.f32 %v40_v51, %v134_v43  ;;  %v160_v56 = vsub.f32 %v26_v52, %v126_v39 }
  0x81   :  { %v188_v57 = vadd.f32 %v187_v53, %v169_v49  ;;  %v176_v58 = vadd.f32 %v175_v54, %v167_v50  ;;  %v170_v59 = vmax.f32 %v162_v55, 0.0  ;;  %v168_v60 = vmax.f32 %v160_v56, 0.0 }
  0x82   :  { %v54_v61 = vpop.permute.xlu1 %53  ;;  %v47_v62 = vpop.permute.xlu0 %46 }
  0x83   :  { %v189_v63 = vrot.slane %v188_v57, 2  ;;  %v177_v0 = vrot.slane %v176_v58, 2  ;;  %v193_v1 = vrot.slane %v170_v59, 4  ;;  %v181_v2 = vrot.slane %v168_v60, 4 }
  0x84   :  { %v164_v3 = vsub.f32 %v54_v61, %v142_v40  ;;  %v163_v4 = vsub.f32 %v47_v62, %v138_v35 }
  0x85   :  { %v190_v5 = vadd.f32 %v189_v63, %v188_v57  ;;  %v178_v6 = vadd.f32 %v177_v0, %v176_v58  ;;  %v194_v7 = vadd.f32 %v193_v1, %v170_v59  ;;  %v182_v8 = vadd.f32 %v181_v2, %v168_v60 }
  0x86   :  { %v172_v9 = vmax.f32 %v164_v3, 0.0  ;;  %v171_v10 = vmax.f32 %v163_v4, 0.0  ;;  %v68_v11 = vpop.permute.xlu1 %67  ;;  %v61_v12 = vpop.permute.xlu0 %60 }
  0x87   :  { %v195_v13 = vrot.slane %v194_v7, 2  ;;  %v183_v14 = vrot.slane %v182_v8, 2  ;;  %v166_v17 = vsub.f32 %v68_v11, %v150_v44  ;;  %v165_v18 = vsub.f32 %v61_v12, %v146_v42 }
  0x88   :  { %v205_v15 = vrot.slane %v172_v9, 4  ;;  %v199_v16 = vrot.slane %v171_v10, 4  ;;  %v191_v19 = vrot.slane %v190_v5, 1  ;;  %v179_v20 = vrot.slane %v178_v6, 1 }
  0x89   :  { %v196_v21 = vadd.f32 %v195_v13, %v194_v7  ;;  %v184_v22 = vadd.f32 %v183_v14, %v182_v8  ;;  %v174_v25 = vmax.f32 %v166_v17, 0.0  ;;  %v173_v26 = vmax.f32 %v165_v18, 0.0 }
  0x8a   :  { %v206_v23 = vadd.f32 %v205_v15, %v172_v9  ;;  %v200_v24 = vadd.f32 %v199_v16, %v171_v10  ;;  %v192_v33 = vadd.f32 %v191_v19, %v190_v5  ;;  %v180_v34 = vadd.f32 %v179_v20, %v178_v6 }
  0x8b   :  { %v197_v27 = vrot.slane %v196_v21, 1  ;;  %v185_v28 = vrot.slane %v184_v22, 1  ;;  %v217_v31 = vrot.slane %v174_v25, 4  ;;  %v211_v32 = vrot.slane %v173_v26, 4 }
  0x8c   :  { %v207_v29 = vrot.slane %v206_v23, 2  ;;  %v201_v30 = vrot.slane %v200_v24, 2 }
  0x8d   :  { %v186_v35 = vadd.f32 %v185_v28, %v184_v22  ;;  %v218_v38 = vadd.f32 %v217_v31, %v174_v25  ;;  %v212_v39 = vadd.f32 %v211_v32, %v173_v26  ;;  %v198_v40 = vadd.f32 %v197_v27, %v196_v21 }
  0x8e   :  { %v208_v36 = vadd.f32 %v207_v29, %v206_v23  ;;  %v202_v37 = vadd.f32 %v201_v30, %v200_v24 }
  0x8f   :  { %v232_v41 = vsel %vm231_vm0, %v186_v35, %v180_v34  ;;  %v219_v45 = vrot.slane %v218_v38, 2  ;;  %v213_v47 = vrot.slane %v212_v39, 2 }
  0x90   :  { %v234_v42 = vsel %vm233_vm1, %v192_v33, %v232_v41  ;;  %v209_v43 = vrot.slane %v208_v36, 1  ;;  %v203_v44 = vrot.slane %v202_v37, 1 }
  0x91   :  { %v236_v46 = vsel %vm235_vm2, %v198_v40, %v234_v42  ;;  %v220_v50 = vadd.f32 %v219_v45, %v218_v38  ;;  %v214_v51 = vadd.f32 %v213_v47, %v212_v39 }
  0x92   :  { %v210_v48 = vadd.f32 %v209_v43, %v208_v36  ;;  %v204_v49 = vadd.f32 %v203_v44, %v202_v37 }
  0x93   :  { %v221_v53 = vrot.slane %v220_v50, 1  ;;  %v215_v55 = vrot.slane %v214_v51, 1 }
  0x94   :  { %v238_v52 = vsel %vm237_vm3, %v204_v49, %v236_v46 }
  0x95   :  { %v240_v54 = vsel %vm239_vm4, %v210_v48, %v238_v52  ;;  %v222_v56 = vadd.f32 %v221_v53, %v220_v50  ;;  %v216_v57 = vadd.f32 %v215_v55, %v214_v51 }
  0x97   :  { %v242_v58 = vsel %vm241_vm5, %v216_v57, %v240_v54 }
  0x98   :  { %v244_v59 = vsel %vm243_vm6, %v222_v56, %v242_v58 }
  0x99   :  { %246 = vst [vmem:[%s293_s2] sm:$0xff] %v244_v59 }

</bundles_post_ra>
